<compile_context>
chip_gen: v6e
topology: v6e:2x2x1
jax: 0.10.0
libtpu: 0.0.40
codegen_flags: <defaults>
</compile_context>

<pallas_src>
import math

import jax
import jax.numpy as jnp
from jax import lax
from jax.experimental import pallas as pl
from jax.experimental.pallas import tpu as pltpu


# Contract the last (H / lane) axis of both operands; no batch dims.
_CONTRACT_H = (((1,), (1,)), ((), ()))

# Max encoder rows streamed per grid step.  512 is a multiple of 8 (sublane),
# 128 (lane-dense output tile) and 256 (v6e/v7x MXU tile), and keeps the
# double-buffered (TILE_S, H) f32 tiles plus the concat intermediates well
# under the scoped-VMEM defaults on v5e/v6e and under v7x's smaller 64 MiB
# VMEM for typical hidden sizes.
_MAX_TILE_S = 512


# ---------------------------------------------------------------------------
# Pallas kernels
# ---------------------------------------------------------------------------

def _score_kernel(enc_ref, dec_ref, out_ref):
    # enc: (TILE_S, H), dec: (1, H)  ->  out: (1, TILE_S)   [lane-dense]
    out_ref[...] = lax.dot_general(
        dec_ref[...], enc_ref[...], _CONTRACT_H,
        preferred_element_type=jnp.float32,
    ).astype(out_ref.dtype)


def _concat_kernel(enc_ref, dec_ref, wfc_ref, wv_ref, out_ref):
    # x = decoder_hidden + encoder_outputs    (broadcast (1,H) + (TILE_S,H))
    x = dec_ref[...] + enc_ref[...]
    # fc(x) = x @ W_fc^T : contract H against axis 1 of W_fc (no transpose).
    h = jnp.tanh(
        lax.dot_general(x, wfc_ref[...], _CONTRACT_H,
                        preferred_element_type=jnp.float32)
    )  # (TILE_S, H)
    # weight(h): W_v (1, H) on the left -> lane-dense (1, TILE_S) output.
    out_ref[...] = lax.dot_general(
        wv_ref[...], h, _CONTRACT_H, preferred_element_type=jnp.float32
    ).astype(out_ref.dtype)


# ---------------------------------------------------------------------------
# Wrappers around pallas_call (grid over the sequence axis)
# ---------------------------------------------------------------------------

def _tile_and_pad(S):
    """Pick the S tile (multiple of 8/128 when tiling) and the padded extent."""
    if S <= _MAX_TILE_S:
        return S, S                       # single tile == full array dims
    s_pad = pl.cdiv(S, _MAX_TILE_S) * _MAX_TILE_S
    return _MAX_TILE_S, s_pad


def _scores_pallas(enc2d, dec_row):
    """(1, H) x (S, H)^T -> (1, S), streamed over S tiles."""
    S, H = enc2d.shape
    tile_s, s_pad = _tile_and_pad(S)
    if s_pad != S:
        enc2d = jnp.pad(enc2d, ((0, s_pad - S), (0, 0)))
    out = pl.pallas_call(
        _score_kernel,
        out_shape=jax.ShapeDtypeStruct((1, s_pad), jnp.float32),
        grid=(s_pad // tile_s,),
        in_specs=[
            pl.BlockSpec((tile_s, H), lambda i: (i, 0)),   # streamed enc tiles
            pl.BlockSpec((1, H), lambda i: (0, 0)),        # resident dec row
        ],
        out_specs=pl.BlockSpec((1, tile_s), lambda i: (0, i)),
        compiler_params=pltpu.CompilerParams(
            dimension_semantics=("parallel",)),
    )(enc2d, dec_row)
    return out[:, :S]


def _concat_scores_pallas(enc2d, dec_row, w_fc, w_v):
    """tanh((dec + enc) @ W_fc^T) @ W_v^T  -> (1, S), streamed over S tiles."""
    S, H = enc2d.shape
    tile_s, s_pad = _tile_and_pad(S)
    if s_pad != S:
        enc2d = jnp.pad(enc2d, ((0, s_pad - S), (0, 0)))
    out = pl.pallas_call(
        _concat_kernel,
        out_shape=jax.ShapeDtypeStruct((1, s_pad), jnp.float32),
        grid=(s_pad // tile_s,),
        in_specs=[
            pl.BlockSpec((tile_s, H), lambda i: (i, 0)),   # streamed enc tiles
            pl.BlockSpec((1, H), lambda i: (0, 0)),        # resident dec row
            pl.BlockSpec((H, H), lambda i: (0, 0)),        # resident W_fc
            pl.BlockSpec((1, H), lambda i: (0, 0)),        # resident W_v
        ],
        out_specs=pl.BlockSpec((1, tile_s), lambda i: (0, i)),
        compiler_params=pltpu.CompilerParams(
            dimension_semantics=("parallel",)),
    )(enc2d, dec_row, w_fc, w_v)
    return out[:, :S]


# ---------------------------------------------------------------------------
# Module-equivalent wrapper
# ---------------------------------------------------------------------------

class AttentionPallas:
    def __init__(self, hidden_size, method="dot", key=jax.random.PRNGKey(42)):
        assert method in ("dot", "general", "concat")
        self.method = method
        self.hidden_size = hidden_size
        k_fc, k_w = jax.random.split(key)
        bound = 1.0 / math.sqrt(hidden_size)
        self.W_fc = None
        self.W_v = None
        if method in ("general", "concat"):
            # nn.Linear(hidden, hidden, bias=False).weight : (H, H)
            self.W_fc = jax.random.uniform(
                k_fc, (hidden_size, hidden_size), jnp.float32, -bound, bound
            )
        if method == "concat":
            # nn.Linear(hidden, 1, bias=False).weight : (1, H)
            self.W_v = jax.random.uniform(
                k_w, (1, hidden_size), jnp.float32, -bound, bound
            )

    def __call__(self, decoder_hidden, encoder_outputs):
        # decoder_hidden: (1, H)   encoder_outputs: (1, S, H)
        H = self.hidden_size
        S = encoder_outputs.shape[1]
        enc2d = encoder_outputs.reshape(S, H).astype(jnp.float32)
        dec_row = decoder_hidden.reshape(1, H).astype(jnp.float32)

        if self.method == "dot":
            return _scores_pallas(enc2d, dec_row)                  # (1, S)

        if self.method == "general":
            # Hoist the decoder projection out of the S-tiled loop: tiny GEMV,
            # keeps W_fc out of per-tile VMEM and avoids recompute per tile.
            proj = lax.dot_general(
                dec_row, self.W_fc, _CONTRACT_H,
                precision=lax.Precision.HIGHEST,
            )  # (1, H)  ==  dec @ W_fc^T
            return _scores_pallas(enc2d, proj)                     # (1, S)

        # concat
        scores = _concat_scores_pallas(enc2d, dec_row, self.W_fc, self.W_v)
        return scores.reshape(1, 1, S)   # matches PyTorch (1, 1, S)


# ---------------------------------------------------------------------------
# Pure-JAX references (for correctness checking)
# ---------------------------------------------------------------------------

def _ref(attn, decoder_hidden, encoder_outputs):
    hp = lax.Precision.HIGHEST
    dec = decoder_hidden.reshape(-1)  # (H,)
    if attn.method == "dot":
        return jnp.einsum("bsh,h->bs", encoder_outputs, dec, precision=hp)
    if attn.method == "general":
        proj = jnp.einsum("h,oh->o", dec, attn.W_fc, precision=hp)
        return jnp.einsum("bsh,h->bs", encoder_outputs, proj, precision=hp)
    # concat
    x = decoder_hidden + encoder_outputs[:, None, :, :]  # (1,1,S,H)
    h = jnp.tanh(jnp.einsum("bqsh,oh->bqso", x, attn.W_fc, precision=hp))
    return jnp.einsum("bqsh,oh->bqso", h, attn.W_v, precision=hp)[..., 0]


# ---------------------------------------------------------------------------

if __name__ == "__main__":
    hidden = 32
    key = jax.random.PRNGKey(0)
    k_dec, k_enc = jax.random.split(key)

    # seq=8 exercises the single-tile path (block == full array dims);
    # seq=1100 exercises the padded, multi-tile streaming grid path.
    for seq in (8, 1100):
        decoder_hidden = jax.random.normal(k_dec, (1, hidden), jnp.float32)
        encoder_outputs = jax.random.normal(k_enc, (1, seq, hidden), jnp.float32)

        for method in ("dot", "general", "concat"):
            attn = AttentionPallas(hidden, method=method)
            out = jax.block_until_ready(attn(decoder_hidden, encoder_outputs))
            ref = _ref(attn, decoder_hidden, encoder_outputs)
            expected_shape = (1, 1, seq) if method == "concat" else (1, seq)
            assert out.shape == expected_shape, (method, seq, out.shape)
            assert jnp.allclose(out, ref, atol=1e-4, rtol=1e-4), (method, seq)

    print("KERNEL_OK")
</pallas_src>

<mosaic_0001>
module attributes {stable_mosaic.version = 11 : i64} {
  func.func @_score_kernel(%arg0: i32, %arg1: memref<8x32xf32, #tpu.memory_space<vmem>>, %arg2: memref<1x32xf32, #tpu.memory_space<vmem>>, %arg3: memref<1x8xf32, #tpu.memory_space<vmem>>) attributes {dimension_semantics = [#tpu.dimension_semantics<parallel>], iteration_bounds = array<i64: 1>, scalar_prefetch = 0 : i64, scratch_operands = 0 : i64, tpu.core_type = #tpu.core_type<tc>, window_params = [{transform_indices = @transform_0, window_bounds = array<i64: 8, 32>}, {pipeline_mode = #tpu.pipeline_mode<synchronous>, transform_indices = @transform_1, window_bounds = array<i64: 1, 32>}, {transform_indices = @transform_2, window_bounds = array<i64: 1, 8>}]} {
    %c0 = arith.constant 0 : index
    %c0_0 = arith.constant 0 : index
    %0 = vector.load %arg2[%c0, %c0_0] : memref<1x32xf32, #tpu.memory_space<vmem>>, vector<1x32xf32>
    %c0_1 = arith.constant 0 : index
    %c0_2 = arith.constant 0 : index
    %1 = vector.load %arg1[%c0_1, %c0_2] : memref<8x32xf32, #tpu.memory_space<vmem>>, vector<8x32xf32>
    %cst = arith.constant dense<0.000000e+00> : vector<1x8xf32>
    %2 = tpu.matmul %0, %1, %cst {dimension_numbers = #tpu.dot_dimension_numbers<[1], [1], [0], [0], [0, 0, 1, 0], [], []>} : vector<1x32xf32>, vector<8x32xf32>, vector<1x8xf32> -> vector<1x8xf32>
    %c0_3 = arith.constant 0 : index
    %c0_4 = arith.constant 0 : index
    %3 = vector.load %arg3[%c0_3, %c0_4] : memref<1x8xf32, #tpu.memory_space<vmem>>, vector<1x8xf32>
    tpu.vector_store %arg3[%c0_3, %c0_4], %2 {strides = array<i32>} : memref<1x8xf32, #tpu.memory_space<vmem>>, vector<1x8xf32>,
    return
  }
  func.func @transform_0(%arg0: i32) -> (i32, i32) {
    %c0_i32 = arith.constant 0 : i32
    %c0_i32_0 = arith.constant 0 : i32
    return %arg0, %c0_i32 : i32, i32
  }
  func.func @transform_1(%arg0: i32) -> (i32, i32) {
    %c0_i32 = arith.constant 0 : i32
    %c0_i32_0 = arith.constant 0 : i32
    %c0_i32_1 = arith.constant 0 : i32
    return %c0_i32, %c0_i32_0 : i32, i32
  }
  func.func @transform_2(%arg0: i32) -> (i32, i32) {
    %c0_i32 = arith.constant 0 : i32
    %c0_i32_0 = arith.constant 0 : i32
    return %c0_i32, %arg0 : i32, i32
  }
}

</mosaic_0001>

<bundles_post_ra>
// kernel: tpu_custom_call.1
= control target key start
LH: loop header
LB: loop body
LE: loop exit
PB: predicated region body
PF: predicated region fallthrough
CT: control target
= control target key end

     0   :  { %7 = vsyncpa [#allocation3], 0  ;;  %s205_s0 = inlined_call_operand.hbm [shape: f32[8,32], index: 0, kind: input, shape index: {}]   ;;  %s206_s1 = inlined_call_operand.vmem [shape: f32[1,32], index: 1, kind: input, shape index: {}]   ;;  %s207_s2 = inlined_call_operand.hbm [shape: f32[1,8], index: 2, kind: output, shape index: {}]  }
   0x1   :  { %8 = vsyncpa [#allocation4], 0  ;;  %s177_s9 = smov [#allocation2]  }
   0x2   :  { %s15_s10 = sshll.u32 %s177_s9, 4  ;;  %s16_s10 = int_to_ptr.vmem [resolvable:$true] %s15_s10 }
   0x3   :  { %s141_s11 = scalar_lea.vmem %s16_s10, 128  ;;  %p146_p1 = scmp.lt.s32.totalorder %s16_s10, %s16_s10 }
   0x4   :  { %p142_p0 = scmp.ne.s32.totalorder %s16_s10, %s141_s11  ;;  %p147_p2 = scmp.lt.s32.totalorder %s141_s11, %s141_s11 }
   0x6   :  { %p148_p3 = por %p147_p2, %p146_p1 }
   0x8   :  { %p149_p4 = pnand %p148_p3, %p142_p0 }
   0xa   :  { %152 = shalt.err (!%p149_p4)
}
   0xb   :  { %18 = dma.hbm_to_vmem [thread:$0]  %s205_s0, 128, %s16_s10, [#allocation3]  }
   0xc   :  { %173 = dma.done.wait [#allocation3], 128  }
   0xd   :  { %174 = vsyncadd [#allocation3], 4294967168  ;;  %v178_v0 = vmov 0.0   ;;  %vm179_vm0 = vmmov 0   ;;  %vm26_vm1 = vcmask 261120   ;;  %v25_v1 = vld [vmem:[#allocation2] sm:$0xff] }
   0xe   :  { %124 = vmatprep.subr.mxu0 %v178_v0  ;;  %126 = vmatprep.mubr.msk.f32.mxu0 %vm179_vm0, %v178_v0  ;;  %v24_v2 = vld [vmem:[%s206_s1] sm:$0x1]  ;;  %s180_s16 = smov [#allocation5]   ;;  %vm103_vm2 = vcmask 57344  }
   0xf   :  { %125 = vmatpush3.xpose.msk.msra.mxu0 %vm26_vm1, %v25_v1  ;;  %s111_s17 = sshll.u32 %s180_s16, 4  ;;  %s112_s17 = int_to_ptr.vmem [resolvable:$true] %s111_s17 }
  0x10   :  { %s153_s0 = scalar_lea.vmem %s112_s17, 16  ;;  %s157_s18 = scalar_lea.vmem %s112_s17, 32 }
  0x11   :  { %p154_p5 = scmp.ne.s32.totalorder %s112_s17, %s153_s0  ;;  %p158_p6 = scmp.lt.s32.totalorder %s112_s17, %s112_s17 }
  0x12   :  { %127 = vmatmul.mubr.msk.f32.vlgmr.msra.gmra.mxu0 %vm26_vm1, %v24_v2  ;;  %p159_p7 = scmp.lt.s32.totalorder %s157_s18, %s153_s0 }
  0x14   :  { %p160_p8 = por %p159_p7, %p158_p6 }
  0x16   :  { %p161_p9 = pnand %p160_p8, %p154_p5 }
  0xd2   :  { %v99_v3 = vpop.f32.mrf.mxu0 }
  0xd3   :  { %104 = vst.msk [vmem:[#allocation5] sm:$0x1] %vm103_vm2, %v99_v3 }
  0xd4   :  { %v128_v4 = vpop.f32.mrf.mxu0 }
  0xd5   :  { %164 = shalt.err (!%p161_p9)
}
  0xd6   :  { %114 = dma.vmem_to_hbm [thread:$0]  %s112_s17, 16, %s207_s2, [#allocation4]  }
  0xd7   :  { %175 = dma.done.wait [#allocation4], 16  }
  0xd8   :  { %176 = vsyncadd [#allocation4], 4294967280 }
  0xd9   :  { %118 = vsyncpa [#allocation3], 1 }
  0xda   :  { %119 = vsyncpa [#allocation4], 1 }

</bundles_post_ra>
